<compile_context>
chip_gen: v7x
topology: tpu7x:2x2x1
jax: 0.10.0
libtpu: 0.0.40
codegen_flags: <defaults>
</compile_context>

<pallas_src>
import math

import jax
import jax.numpy as jnp
from jax import lax
from jax.experimental import pallas as pl
from jax.experimental.pallas import tpu as pltpu


def _round_up(x, m):
    return (x + m - 1) // m * m


def _largest_tile(total, limit):
    """Largest multiple of 128 that divides `total` (itself a 128-multiple) and <= limit."""
    best = 128
    c = 256
    while c <= min(limit, total):
        if total % c == 0:
            best = c
        c += 128
    return best


_GELU_C = math.sqrt(2.0 / math.pi)


def _gelu_tanh(x):
    # Matches nn.GELU(approximate='tanh'); evaluated in f32 (tanh -> EUP,
    # polynomial -> VPU) so semantics match the PyTorch module.
    return 0.5 * x * (1.0 + jnp.tanh(_GELU_C * (x + 0.044715 * x * x * x)))


def _make_mlp_kernel(resident, th, use_scratch):
    def kernel(x_ref, w1t_ref, b1_ref, w2_ref, b2_ref, o_ref, *scratch):
        # For f32 outputs we accumulate straight into the revisited output block.
        acc_ref = scratch[0] if use_scratch else o_ref
        k = pl.program_id(1)

        @pl.when(k == 0)
        def _():
            acc_ref[...] = jnp.zeros_like(acc_ref)

        if resident:
            # Weights are fully VMEM-resident; slice this hidden chunk (sublane
            # slice with a th-aligned dynamic start).
            off = pl.multiple_of(k * th, th)
            w1t = w1t_ref[pl.ds(off, th), :]     # (TH, D) == w1[:, chunk].T
            w2 = w2_ref[pl.ds(off, th), :]       # (TH, D)
        else:
            w1t = w1t_ref[...]
            w2 = w2_ref[...]

        # fc1 chunk on the MXU: (TM, D) . (TH, D)^T -> (TM, TH), bf16 operands,
        # f32 accumulation.
        xb = x_ref[...].astype(jnp.bfloat16)
        h = lax.dot_general(xb, w1t, (((1,), (1,)), ((), ())),
                            preferred_element_type=jnp.float32)
        # Bias + tanh-GELU in f32.
        h = _gelu_tanh(h + b1_ref[...])

        # fc2 partial contraction of this hidden chunk into the f32 accumulator.
        acc_ref[...] += jnp.dot(h.astype(jnp.bfloat16), w2,
                                preferred_element_type=jnp.float32)

        @pl.when(k == pl.num_programs(1) - 1)
        def _():
            o_ref[...] = (acc_ref[...] + b2_ref[...]).astype(o_ref.dtype)

    return kernel


def _vmem_capacity_bytes():
    try:
        cap = int(getattr(pltpu.get_tpu_info(), "vmem_capacity_bytes", 0))
        if cap > 0:
            return cap
    except Exception:
        pass
    return 64 << 20  # conservative default (v7x per-core VMEM)


def mlp_forward(x, w1, b1, w2, b2, *, tm=256, th=512):
    """Fused MLP: gelu_tanh(x @ w1 + b1) @ w2 + b2.

    x: (..., D); w1: (D, H); b1: (H,); w2: (H, D); b2: (D,)  with H = 4*D.
    Call under jax.jit so the one-time weight padding / bf16 cast is fused.
    """
    orig_shape = x.shape
    D = orig_shape[-1]
    H = w1.shape[1]
    x2d = x.reshape(-1, D)
    R = x2d.shape[0]

    x_item = jnp.dtype(x.dtype).itemsize
    out_dtype = x.dtype
    out_item = jnp.dtype(out_dtype).itemsize
    use_scratch = out_dtype != jnp.float32

    # Lane-dense padding: last dims padded to multiples of 128.
    D_pad = _round_up(D, 128)
    H_pad = _round_up(H, 128)

    # Hidden chunk: largest 128-multiple divisor of H_pad <= th (no wasted
    # zero-padding k-iterations).
    TH = _largest_tile(H_pad, max(th, 128))

    # Row tile: multiple of 8; guarantee >= 2 row tiles when enough rows exist
    # so the "parallel" axis can shard across both TensorCores on v7x.
    R8 = _round_up(max(R, 1), 8)
    TM = min(tm, R8)
    if R8 >= 16:
        TM = min(TM, _round_up((R8 + 1) // 2, 8))
    R_pad = _round_up(R8, TM)

    # Generation-aware VMEM budget (128 MiB on v5e/v6e, 64 MiB on v7x).
    vmem_cap = _vmem_capacity_bytes()
    vmem_limit = int(vmem_cap * 0.85)
    budget = vmem_limit - (6 << 20)

    def footprint(tm_, th_, resident_):
        f = 2 * tm_ * D_pad * x_item             # x tiles (double-buffered)
        f += 2 * tm_ * D_pad * out_item          # out tiles (double-buffered)
        if use_scratch:
            f += tm_ * D_pad * 4                 # f32 accumulator scratch
        if resident_:
            f += 2 * (2 * H_pad * D_pad * 2)     # resident bf16 w1t + w2
        else:
            f += 2 * (2 * th_ * D_pad * 2)       # streamed bf16 panels
        f += 2 * (th_ * 4 + D_pad * 4)           # bias tiles
        return f

    resident = footprint(TM, TH, True) <= budget
    if not resident:
        # Shrink the hidden chunk, then the row tile, until the streamed
        # double-buffered footprint fits the budget.
        while footprint(TM, TH, False) > budget and TH > 128:
            TH = _largest_tile(H_pad, TH // 2)
        while footprint(TM, TH, False) > budget and TM > 8:
            TM = max(8, _round_up(TM // 2, 8))
        R_pad = _round_up(R8, TM)

    # Pad weights to (H_pad, D_pad) bf16 (fc1 weight transposed) so both
    # matmuls contract along the lane dim and the hidden chunk is a sublane
    # slice; biases stay f32.
    xp = jnp.pad(x2d, ((0, R_pad - R), (0, D_pad - D)))
    w1t = jnp.pad(w1.T, ((0, H_pad - H), (0, D_pad - D))).astype(jnp.bfloat16)
    w2p = jnp.pad(w2, ((0, H_pad - H), (0, D_pad - D))).astype(jnp.bfloat16)
    b1p = jnp.pad(b1.astype(jnp.float32), (0, H_pad - H)).reshape(1, H_pad)
    b2p = jnp.pad(b2.astype(jnp.float32), (0, D_pad - D)).reshape(1, D_pad)

    grid = (R_pad // TM, H_pad // TH)
    n_row_tiles = grid[0]

    if resident:
        w1_spec = pl.BlockSpec((H_pad, D_pad), lambda i, k: (0, 0))
        w2_spec = pl.BlockSpec((H_pad, D_pad), lambda i, k: (0, 0))
    else:
        w1_spec = pl.BlockSpec((TH, D_pad), lambda i, k: (k, 0))
        w2_spec = pl.BlockSpec((TH, D_pad), lambda i, k: (k, 0))

    kernel = _make_mlp_kernel(resident, TH, use_scratch)
    scratch_shapes = ((pltpu.VMEM((TM, D_pad), jnp.float32),)
                      if use_scratch else ())

    w_bytes = 2 * H_pad * D_pad * 2  # both weight matrices, bf16
    cost = pl.CostEstimate(
        flops=4 * R_pad * D_pad * H_pad,                   # two matmuls
        transcendentals=R_pad * H_pad,                     # tanh in GELU
        bytes_accessed=(R_pad * D_pad * (x_item + out_item)
                        + (w_bytes if resident else w_bytes * n_row_tiles)
                        + 4 * (H_pad + D_pad)),
    )

    out = pl.pallas_call(
        kernel,
        out_shape=jax.ShapeDtypeStruct((R_pad, D_pad), out_dtype),
        grid=grid,
        in_specs=[
            pl.BlockSpec((TM, D_pad), lambda i, k: (i, 0)),   # x rows
            w1_spec,                                          # fc1 weight (H, D)
            pl.BlockSpec((1, TH), lambda i, k: (0, k)),       # b1 chunk
            w2_spec,                                          # fc2 weight (H, D)
            pl.BlockSpec((1, D_pad), lambda i, k: (0, 0)),    # b2
        ],
        out_specs=pl.BlockSpec((TM, D_pad), lambda i, k: (i, 0)),
        scratch_shapes=scratch_shapes,
        compiler_params=pltpu.CompilerParams(
            dimension_semantics=("parallel", "arbitrary"),
            vmem_limit_bytes=vmem_limit,
        ),
        cost_estimate=cost,
    )(xp, w1t, b1p, w2p, b2p)

    return out[:R, :D].reshape(orig_shape)


def init_mlp_params(key, dim=64, dtype=jnp.float32):
    """Deterministic init mirroring nn.Linear defaults (uniform +-1/sqrt(fan_in))."""
    hidden = dim * 4
    k1, k2, k3, k4 = jax.random.split(key, 4)
    bound1 = 1.0 / math.sqrt(dim)
    bound2 = 1.0 / math.sqrt(hidden)
    w1 = jax.random.uniform(k1, (dim, hidden), dtype, -bound1, bound1)
    b1 = jax.random.uniform(k2, (hidden,), dtype, -bound1, bound1)
    w2 = jax.random.uniform(k3, (hidden, dim), dtype, -bound2, bound2)
    b2 = jax.random.uniform(k4, (dim,), dtype, -bound2, bound2)
    return w1, b1, w2, b2


if __name__ == "__main__":
    dim = 64
    batch, seq = 2, 8

    key = jax.random.PRNGKey(0)
    kx, kp = jax.random.split(key)
    x = jax.random.normal(kx, (batch, seq, dim), dtype=jnp.float32)
    w1, b1, w2, b2 = init_mlp_params(kp, dim=dim)

    mlp = jax.jit(mlp_forward)  # jit so padding / bf16 casts are fused & cached
    out = jax.block_until_ready(mlp(x, w1, b1, w2, b2))

    # Pure-JAX reference (tanh-GELU MLP).  The kernel uses bf16 MXU operands
    # with f32 accumulation, so compare with a bf16-appropriate tolerance.
    ref = jax.nn.gelu(x @ w1 + b1, approximate=True) @ w2 + b2
    assert out.shape == x.shape
    assert out.dtype == x.dtype
    err = float(jnp.max(jnp.abs(out - ref)))
    assert jnp.allclose(out, ref, atol=2e-2, rtol=2e-2), f"max abs err {err}"

    print("KERNEL_OK")
</pallas_src>

<mosaic_0001>
module attributes {stable_mosaic.version = 11 : i64} {
  func.func @kernel(%arg0: i32, %arg1: i32, %arg2: memref<8x128xf32, #tpu.memory_space<vmem>>, %arg3: memref<256x128xbf16, #tpu.memory_space<vmem>>, %arg4: memref<1x256xf32, #tpu.memory_space<vmem>>, %arg5: memref<256x128xbf16, #tpu.memory_space<vmem>>, %arg6: memref<1x128xf32, #tpu.memory_space<vmem>>, %arg7: memref<8x128xf32, #tpu.memory_space<vmem>>) attributes {dimension_semantics = [#tpu.dimension_semantics<parallel>, #tpu.dimension_semantics<arbitrary>], iteration_bounds = array<i64: 2, 1>, scalar_prefetch = 0 : i64, scratch_operands = 0 : i64, tpu.core_type = #tpu.core_type<tc>, window_params = [{transform_indices = @transform_0, window_bounds = array<i64: 8, 128>}, {pipeline_mode = #tpu.pipeline_mode<synchronous>, transform_indices = @transform_1, window_bounds = array<i64: 256, 128>}, {transform_indices = @transform_2, window_bounds = array<i64: 1, 256>}, {pipeline_mode = #tpu.pipeline_mode<synchronous>, transform_indices = @transform_3, window_bounds = array<i64: 256, 128>}, {pipeline_mode = #tpu.pipeline_mode<synchronous>, transform_indices = @transform_4, window_bounds = array<i64: 1, 128>}, {transform_indices = @transform_5, window_bounds = array<i64: 8, 128>}]} {
    %c0_i32 = arith.constant 0 : i32
    %0 = arith.cmpi eq, %arg1, %c0_i32 : i32
    %1 = arith.extui %0 : i1 to i32
    %c0_i32_0 = arith.constant 0 : i32
    %2 = arith.cmpi ne, %1, %c0_i32_0 : i32
    scf.if %2 {
      %cst_17 = arith.constant 0.000000e+00 : f32
      %36 = vector.broadcast %cst_17 : f32 to vector<8x128xf32>
      %c0_18 = arith.constant 0 : index
      %c0_19 = arith.constant 0 : index
      %37 = vector.load %arg7[%c0_18, %c0_19] : memref<8x128xf32, #tpu.memory_space<vmem>>, vector<8x128xf32>
      tpu.vector_store %arg7[%c0_18, %c0_19], %36 {strides = array<i32>} : memref<8x128xf32, #tpu.memory_space<vmem>>, vector<8x128xf32>,
    } else {
    }
    %c256_i32 = arith.constant 256 : i32
    %3 = arith.muli %arg1, %c256_i32 : i32
    %4 = tpu.assume_multiple %3, 256 : i32
    %5 = arith.index_cast %4 : i32 to index
    %c0 = arith.constant 0 : index
    %6 = vector.load %arg3[%5, %c0] : memref<256x128xbf16, #tpu.memory_space<vmem>>, vector<256x128xbf16>
    %7 = arith.index_cast %4 : i32 to index
    %c0_1 = arith.constant 0 : index
    %8 = vector.load %arg5[%7, %c0_1] : memref<256x128xbf16, #tpu.memory_space<vmem>>, vector<256x128xbf16>
    %c0_2 = arith.constant 0 : index
    %c0_3 = arith.constant 0 : index
    %9 = vector.load %arg2[%c0_2, %c0_3] : memref<8x128xf32, #tpu.memory_space<vmem>>, vector<8x128xf32>
    %10 = arith.truncf %9 : vector<8x128xf32> to vector<8x128xbf16>
    %cst = arith.constant dense<0.000000e+00> : vector<8x256xf32>
    %11 = tpu.matmul %10, %6, %cst {dimension_numbers = #tpu.dot_dimension_numbers<[1], [1], [0], [0], [0, 0, 1, 0], [], []>} : vector<8x128xbf16>, vector<256x128xbf16>, vector<8x256xf32> -> vector<8x256xf32>
    %c0_4 = arith.constant 0 : index
    %c0_5 = arith.constant 0 : index
    %12 = vector.load %arg4[%c0_4, %c0_5] : memref<1x256xf32, #tpu.memory_space<vmem>>, vector<1x256xf32>
    %13 = vector.broadcast %12 : vector<1x256xf32> to vector<8x256xf32>
    %14 = arith.addf %11, %13 : vector<8x256xf32>
    %cst_6 = arith.constant 5.000000e-01 : f32
    %15 = vector.broadcast %cst_6 : f32 to vector<8x256xf32>
    %16 = arith.mulf %15, %14 : vector<8x256xf32>
    %cst_7 = arith.constant 4.471500e-02 : f32
    %17 = vector.broadcast %cst_7 : f32 to vector<8x256xf32>
    %18 = arith.mulf %17, %14 : vector<8x256xf32>
    %19 = arith.mulf %18, %14 : vector<8x256xf32>
    %20 = arith.mulf %19, %14 : vector<8x256xf32>
    %21 = arith.addf %14, %20 : vector<8x256xf32>
    %cst_8 = arith.constant 0.797884583 : f32
    %22 = vector.broadcast %cst_8 : f32 to vector<8x256xf32>
    %23 = arith.mulf %22, %21 : vector<8x256xf32>
    %24 = math.tanh %23 : vector<8x256xf32>
    %cst_9 = arith.constant 1.000000e+00 : f32
    %25 = vector.broadcast %cst_9 : f32 to vector<8x256xf32>
    %26 = arith.addf %25, %24 : vector<8x256xf32>
    %27 = arith.mulf %16, %26 : vector<8x256xf32>
    %c0_10 = arith.constant 0 : index
    %c0_11 = arith.constant 0 : index
    %28 = vector.load %arg7[%c0_10, %c0_11] : memref<8x128xf32, #tpu.memory_space<vmem>>, vector<8x128xf32>
    %29 = arith.truncf %27 : vector<8x256xf32> to vector<8x256xbf16>
    %cst_12 = arith.constant dense<0.000000e+00> : vector<8x128xf32>
    %30 = tpu.matmul %29, %8, %cst_12 {dimension_numbers = #tpu.dot_dimension_numbers<[1], [0], [0], [1], [0, 0, 1, 1], [], []>} : vector<8x256xbf16>, vector<256x128xbf16>, vector<8x128xf32> -> vector<8x128xf32>
    %31 = arith.addf %28, %30 : vector<8x128xf32>
    %c0_13 = arith.constant 0 : index
    %c0_14 = arith.constant 0 : index
    %32 = vector.load %arg7[%c0_13, %c0_14] : memref<8x128xf32, #tpu.memory_space<vmem>>, vector<8x128xf32>
    tpu.vector_store %arg7[%c0_13, %c0_14], %31 {strides = array<i32>} : memref<8x128xf32, #tpu.memory_space<vmem>>, vector<8x128xf32>,
    %c0_i32_15 = arith.constant 0 : i32
    %33 = arith.cmpi eq, %arg1, %c0_i32_15 : i32
    %34 = arith.extui %33 : i1 to i32
    %c0_i32_16 = arith.constant 0 : i32
    %35 = arith.cmpi ne, %34, %c0_i32_16 : i32
    scf.if %35 {
      %c0_17 = arith.constant 0 : index
      %c0_18 = arith.constant 0 : index
      %36 = vector.load %arg7[%c0_17, %c0_18] : memref<8x128xf32, #tpu.memory_space<vmem>>, vector<8x128xf32>
      %c0_19 = arith.constant 0 : index
      %c0_20 = arith.constant 0 : index
      %37 = vector.load %arg6[%c0_19, %c0_20] : memref<1x128xf32, #tpu.memory_space<vmem>>, vector<1x128xf32>
      %38 = vector.broadcast %37 : vector<1x128xf32> to vector<8x128xf32>
      %39 = arith.addf %36, %38 : vector<8x128xf32>
      %c0_21 = arith.constant 0 : index
      %c0_22 = arith.constant 0 : index
      %40 = vector.load %arg7[%c0_21, %c0_22] : memref<8x128xf32, #tpu.memory_space<vmem>>, vector<8x128xf32>
      tpu.vector_store %arg7[%c0_21, %c0_22], %39 {strides = array<i32>} : memref<8x128xf32, #tpu.memory_space<vmem>>, vector<8x128xf32>,
    } else {
    }
    return
  }
  func.func @transform_0(%arg0: i32, %arg1: i32) -> (i32, i32) {
    %c0_i32 = arith.constant 0 : i32
    %c0_i32_0 = arith.constant 0 : i32
    return %arg0, %c0_i32 : i32, i32
  }
  func.func @transform_1(%arg0: i32, %arg1: i32) -> (i32, i32) {
    %c0_i32 = arith.constant 0 : i32
    %c0_i32_0 = arith.constant 0 : i32
    %c0_i32_1 = arith.constant 0 : i32
    return %c0_i32, %c0_i32_0 : i32, i32
  }
  func.func @transform_2(%arg0: i32, %arg1: i32) -> (i32, i32) {
    %c0_i32 = arith.constant 0 : i32
    %c0_i32_0 = arith.constant 0 : i32
    return %c0_i32, %arg1 : i32, i32
  }
  func.func @transform_3(%arg0: i32, %arg1: i32) -> (i32, i32) {
    %c0_i32 = arith.constant 0 : i32
    %c0_i32_0 = arith.constant 0 : i32
    %c0_i32_1 = arith.constant 0 : i32
    return %c0_i32, %c0_i32_0 : i32, i32
  }
  func.func @transform_4(%arg0: i32, %arg1: i32) -> (i32, i32) {
    %c0_i32 = arith.constant 0 : i32
    %c0_i32_0 = arith.constant 0 : i32
    %c0_i32_1 = arith.constant 0 : i32
    return %c0_i32, %c0_i32_0 : i32, i32
  }
  func.func @transform_5(%arg0: i32, %arg1: i32) -> (i32, i32) {
    %c0_i32 = arith.constant 0 : i32
    %c0_i32_0 = arith.constant 0 : i32
    return %arg0, %c0_i32 : i32, i32
  }
}

</mosaic_0001>

<bundles_post_ra>
// kernel: mlp_forward.1
= control target key start
LH: loop header
LB: loop body
LE: loop exit
PB: predicated region body
PF: predicated region fallthrough
CT: control target
= control target key end

     0   :  { %s927_s18 = smov 0   ;;  %s929_s19 = smov 0   ;;  %s1069_s0 = inlined_call_operand.vmem [shape: f32[16,128], index: 0, kind: input, shape index: {}]   ;;  %s1070_s1 = inlined_call_operand.vmem [shape: bf16[256,128], index: 1, kind: input, shape index: {}]   ;;  %s1071_s2 = inlined_call_operand.vmem [shape: f32[1,256], index: 2, kind: input, shape index: {}]   ;;  %s1072_s3 = inlined_call_operand.vmem [shape: bf16[256,128], index: 3, kind: input, shape index: {}]   ;;  %s1073_s4 = inlined_call_operand.vmem [shape: f32[1,128], index: 4, kind: input, shape index: {}]   ;;  %s1074_s5 = inlined_call_operand.vmem [shape: f32[16,128], index: 5, kind: output, shape index: {}]  }
   0x1   :  { %s931_s20 = smov 0  }
   0x2 LB: > { %s27_s21 = sadd.s32 1, %s891_s19  ;;  %p734_p0 = scmp.ge.s32.totalorder %s895_s20, 1  ;;  %s895_s20 = sphi %s931_s20, %s15_s20   ;;  %s891_s19 = sphi %s929_s19, %s1076_s19   ;;  %s887_s18 = sphi %s927_s18, %s1075_s18  }
   0x3   : > { %p29_p1 = scmp.ge.s32.totalorder %s27_s21, 2  ;;  %p208_p2 = scmp.lt.s32.totalorder %s895_s20, 3 }
   0x5   : > { %s1078_s21 = smov (%p29_p1, %s27_s21), 0  ;;  %p209_p3 = pnand %p734_p0, %p208_p2 }
   0x6   : > { %v837_v0 = vld [vmem:[%s1070_s1 + $0x40] sm:$0xff] (!%p209_p3)   ;;  %v839_v2 = vld [vmem:[%s1070_s1 + $0x48] sm:$0xff] (!%p209_p3)   ;;  %p238_p4 = scmp.lt.s32.totalorder (!%p209_p3), %s887_s18, 1  ;;  %v841_v4 = vld [vmem:[%s1070_s1 + $0x50] sm:$0xff] (!%p209_p3)   ;;  %v332_v34 = vlaneseq (!%p209_p3) }
   0x7   : > { %212 = sbr.rel (%p209_p3) target bundleno = 532 (0x214), region = 40  ;;  %v838_v1 = vld [vmem:[%s1070_s1] sm:$0xff] (!%p209_p3)   ;;  %772 = vmatprep.subr.bf16.mxu0 (!%p209_p3), %v837_v0  ;;  %v840_v3 = vld [vmem:[%s1070_s1 + $0x8] sm:$0xff] (!%p209_p3)   ;;  %v842_v5 = vld [vmem:[%s1070_s1 + $0x10] sm:$0xff] (!%p209_p3)  }
   0x8   : > { %773 = vmatpush3.bf16.xpose.msra.mxu0 (!%p209_p3), %v838_v1  ;;  %v843_v6 = vld [vmem:[%s1070_s1 + $0x58] sm:$0xff] (!%p209_p3)   ;;  %v845_v10 = vld [vmem:[%s1070_s1 + $0x60] sm:$0xff] (!%p209_p3)   ;;  %v847_v12 = vld [vmem:[%s1070_s1 + $0x68] sm:$0xff] (!%p209_p3)   ;;  %v333_v35 = vshrl.u32 (!%p209_p3), %v332_v34, 7 }
   0x9   : > { %774 = vmatprep.subr.bf16.mxu0 (!%p209_p3), %v839_v2  ;;  %v844_v9 = vld [vmem:[%s1070_s1 + $0x18] sm:$0xff] (!%p209_p3)   ;;  %v846_v11 = vld [vmem:[%s1070_s1 + $0x20] sm:$0xff] (!%p209_p3)   ;;  %v848_v13 = vld [vmem:[%s1070_s1 + $0x28] sm:$0xff] (!%p209_p3)  }
   0xa   : > { %v849_v14 = vld [vmem:[%s1070_s1 + $0x70] sm:$0xff] (!%p209_p3)   ;;  %v851_v16 = vld [vmem:[%s1070_s1 + $0x78] sm:$0xff] (!%p209_p3)   ;;  %v853_v18 = vld [vmem:[%s1072_s3 + $0x40] sm:$0xff] (!%p209_p3)   ;;  %v334_v36 = vsub.s32 (!%p209_p3), 0, %v333_v35  ;;  %v338_v38 = vsub.s32 (!%p209_p3), 1, %v333_v35 }
   0xb   : > { %v850_v15 = vld [vmem:[%s1070_s1 + $0x30] sm:$0xff] (!%p209_p3)   ;;  %v852_v17 = vld [vmem:[%s1070_s1 + $0x38] sm:$0xff] (!%p209_p3)   ;;  %v854_v19 = vld [vmem:[%s1072_s3] sm:$0xff] (!%p209_p3)   ;;  %790 = vmatprep.subr.bf16.mxu1 (!%p209_p3), %v853_v18 }
   0xc   : > { %791 = vmatpush3.bf16.msra.mxu1 (!%p209_p3), %v854_v19  ;;  %v855_v20 = vld [vmem:[%s1072_s3 + $0x48] sm:$0xff] (!%p209_p3)   ;;  %v857_v22 = vld [vmem:[%s1072_s3 + $0x50] sm:$0xff] (!%p209_p3)   ;;  %v859_v24 = vld [vmem:[%s1072_s3 + $0x58] sm:$0xff] (!%p209_p3)  }
   0xd   : > { %v856_v21 = vld [vmem:[%s1072_s3 + $0x8] sm:$0xff] (!%p209_p3)   ;;  %792 = vmatprep.subr.bf16.mxu1 (!%p209_p3), %v855_v20  ;;  %v858_v23 = vld [vmem:[%s1072_s3 + $0x10] sm:$0xff] (!%p209_p3)   ;;  %v860_v25 = vld [vmem:[%s1072_s3 + $0x18] sm:$0xff] (!%p209_p3)  }
   0xe   : > { %s1080_s18 = smov (!%p238_p4, %s887_s18), 1  ;;  %v861_v26 = vld [vmem:[%s1072_s3 + $0x60] sm:$0xff]   ;;  %v863_v28 = vld [vmem:[%s1072_s3 + $0x68] sm:$0xff]   ;;  %v865_v30 = vld [vmem:[%s1072_s3 + $0x70] sm:$0xff]  }
   0xf   : > { %s735_s7 = sshll.u32 %s1080_s18, 3  ;;  %v862_v27 = vld [vmem:[%s1072_s3 + $0x20] sm:$0xff]   ;;  %v864_v29 = vld [vmem:[%s1072_s3 + $0x28] sm:$0xff]   ;;  %v866_v31 = vld [vmem:[%s1072_s3 + $0x30] sm:$0xff]  }
  0x10   : > { %775 = vmatpush3.bf16.xpose.msra.mxu0 %v840_v3  ;;  %s241_s10 = scalar_lea.vmem %s1069_s0, %s735_s7  ;;  %793 = vmatpush3.bf16.msra.mxu1 %v856_v21  ;;  %v867_v32 = vld [vmem:[%s1072_s3 + $0x78] sm:$0xff]   ;;  %v330_v37 = vld [vmem:[%s1071_s2] sm:$0x3]  ;;  %s250_s11 = scalar_lea.vmem %s1074_s5, %s735_s7 }
  0x11   : > { %776 = vmatprep.subr.bf16.mxu0 %v841_v4  ;;  %v328_v7 = vld [vmem:[%s241_s10] sm:$0xff]  ;;  %794 = vmatprep.subr.bf16.mxu1 %v857_v22  ;;  %v868_v33 = vld [vmem:[%s1072_s3 + $0x38] sm:$0xff]   ;;  %v335_v39 = vrot.slane %v330_v37, %v334_v36  ;;  %v339_v40 = vrot.slane %v330_v37, %v338_v38 }
  0x12   : > { %v329_v8 = vpack.c.bf16 %v328_v7, %v328_v7  ;;  %v769_v7 = vld [vmem:[%s1073_s4] ss:$0 sm:$0xff] }
  0x14   : > { %788 = vmatprep.mubr.bf16.mxu0 %v329_v8  ;;  %795 = vmatpush3.bf16.msra.mxu1 %v858_v23 }
  0x15   : > { %796 = vmatprep.subr.bf16.mxu1 %v859_v24 }
  0x18   : > { %777 = vmatpush3.bf16.xpose.msra.mxu0 %v842_v5  ;;  %797 = vmatpush3.bf16.msra.mxu1 %v860_v25 }
  0x19   : > { %778 = vmatprep.subr.bf16.mxu0 %v843_v6  ;;  %798 = vmatprep.subr.bf16.mxu1 %v861_v26 }
  0x1c   : > { %799 = vmatpush3.bf16.msra.mxu1 %v862_v27 }
  0x1d   : > { %800 = vmatprep.subr.bf16.mxu1 %v863_v28 }
  0x20   : > { %779 = vmatpush3.bf16.xpose.msra.mxu0 %v844_v9  ;;  %801 = vmatpush3.bf16.msra.mxu1 %v864_v29 }
  0x21   : > { %780 = vmatprep.subr.bf16.mxu0 %v845_v10  ;;  %802 = vmatprep.subr.bf16.mxu1 %v865_v30 }
  0x24   : > { %803 = vmatpush3.bf16.msra.mxu1 %v866_v31 }
  0x25   : > { %804 = vmatprep.subr.bf16.mxu1 %v867_v32 }
  0x28   : > { %781 = vmatpush3.bf16.xpose.msra.mxu0 %v846_v11  ;;  %805 = vmatpush3.bf16.msra.mxu1 %v868_v33 }
  0x29   : > { %782 = vmatprep.subr.bf16.mxu0 %v847_v12 }
  0x30   : > { %783 = vmatpush3.bf16.xpose.msra.mxu0 %v848_v13 }
  0x31   : > { %784 = vmatprep.subr.bf16.mxu0 %v849_v14 }
  0x38   : > { %785 = vmatpush3.bf16.xpose.msra.mxu0 %v850_v15 }
  0x39   : > { %786 = vmatprep.subr.bf16.mxu0 %v851_v16 }
  0x40   : > { %787 = vmatpush3.bf16.xpose.msra.mxu0 %v852_v17 }
  0x47   : > { %789 = vmatmul.mubr.bf16.vlgmr.msra.gmra.mrb[0].mxu0 %v329_v8 }
 0x11a   : > { %v472_v41 = vpop.f32.mrb[0].mxu0 }
 0x11b   : > { %v473_v42 = vadd.f32 %v472_v41, %v335_v39  ;;  %v474_v43 = vpop.f32.mrb[1].mxu0 }
 0x11c   : > { %v475_v44 = vadd.f32 %v474_v43, %v339_v40  ;;  %v476_v45 = vpop.f32.mrb[2].mxu0 }
 0x11d   : > { %v481_v46 = vmul.f32 0.044715, %v473_v42  ;;  %v477_v47 = vpop.f32.mrb[3].mxu0  ;;  %v479_v59 = vmul.f32 0.5, %v473_v42 }
 0x11e   : > { %v482_v48 = vmul.f32 0.044715, %v475_v44  ;;  %v480_v61 = vmul.f32 0.5, %v475_v44 }
 0x11f   : > { %v483_v49 = vmul.f32 %v481_v46, %v473_v42 }
 0x120   : > { %v484_v50 = vmul.f32 %v482_v48, %v475_v44 }
 0x121   : > { %v485_v51 = vmul.f32 %v483_v49, %v473_v42 }
 0x122   : > { %v486_v52 = vmul.f32 %v484_v50, %v475_v44 }
 0x123   : > { %v487_v53 = vadd.f32 %v485_v51, %v473_v42 }
 0x124   : > { %v488_v54 = vadd.f32 %v486_v52, %v475_v44 }
 0x125   : > { %v489_v55 = vmul.f32 0.7978846, %v487_v53 }
 0x126   : > { %v490_v56 = vmul.f32 0.7978846, %v488_v54 }
 0x127   : > { %869 = vtanh.f32 %v489_v55 }
 0x128   : > { %871 = vtanh.f32 %v490_v56 }
 0x131   : > { %v870_v57 = vpop.eup %869 }
 0x132   : > { %v872_v58 = vpop.eup %871  ;;  %v493_v60 = vadd.f32 1.0, %v870_v57 }
 0x133   : > { %v494_v62 = vadd.f32 1.0, %v872_v58 }
 0x134   : > { %v495_v63 = vmul.f32 %v493_v60, %v479_v59 }
 0x135   : > { %v496_v0 = vmul.f32 %v494_v62, %v480_v61 }
 0x136   : > { %v498_v2 = vpack.c.bf16 %v495_v63, %v495_v63 }
 0x137   : > { %v499_v1 = vpack.c.bf16 %v496_v0, %v496_v0 }
 0x139   : > { %628 = vmatprep.mubr.bf16.mxu1 %v499_v1 }
 0x13a   : > { %629 = vmatmul.mubr.bf16.vlgmr.msra.gmra.mrb[0].mxu1 %v498_v2 }
 0x20d   : > { %v806_v3 = vpop.f32.mrb[0].mxu1 }
 0x20e   : > { %v807_v4 = vpop.f32.mrb[1].mxu1 }
 0x20f   : > { %v808_v5 = vadd.f32 %v807_v4, %v806_v3  ;;  %v809_v6 = vpop.f32.mrb[2].mxu1 }
 0x210   : > { %v810_v8 = vpop.f32.mrb[3].mxu1 }
 0x211   : > { %v649_v9 = vadd.f32 %v808_v5, %v769_v7 }
 0x213   : > { %650 = vst [vmem:[%s250_s11] sm:$0xff] %v649_v9 }
 0x214 PF: > { %s15_s20 = sadd.s32 1, %s895_s20   ;;  %s1075_s18 = smov %s891_s19 }
 0x215   : > { %p12_p5 = scmp.ge.s32.totalorder %s15_s20, 4   ;;  %s1076_s19 = smov %s1078_s21 }
 0x217   :  { %14 = sbr.rel (!%p12_p5) target bundleno = 2 (0x2), region = 83 }

</bundles_post_ra>
